<compile_context>
chip_gen: v5e
topology: v5e:2x2
jax: 0.10.0
libtpu: 0.0.40
codegen_flags: <defaults>
</compile_context>

<pallas_src>
import functools

import jax
import jax.numpy as jnp
from jax.experimental import pallas as pl
from jax.experimental.pallas import tpu as pltpu


def _gelu_exact(x):
    # PyTorch nn.GELU() default is the exact erf formulation.
    return 0.5 * x * (1.0 + jax.lax.erf(x * 0.7071067811865476))


def _round_up(x, m):
    return (x + m - 1) // m * m


def _cdiv(a, b):
    return (a + b - 1) // b


def _pad_axis(x, axis, target):
    pad = target - x.shape[axis]
    if pad == 0:
        return x
    widths = [(0, 0)] * x.ndim
    widths[axis] = (0, pad)
    return jnp.pad(x, widths)


# ---------------------------------------------------------------------------
# Kernel 1: fused (scatter-mean of per-point projections) + encoder pos-MLP
#           second layer + residual add.
# Grid = (output-row blocks [parallel], point blocks [arbitrary, reduction]).
# ---------------------------------------------------------------------------
def _scatter_tokens_kernel(feat_ref, dst_ref, q_ref, w_ref, h_ref, w2_ref,
                           b2_ref, out_ref, s_ref, *, p3, in_chans):
    nb = pl.program_id(0)          # output-row block
    mb = pl.program_id(1)          # point block (reduction)
    tn, k = s_ref.shape            # k == p3 * in_chans
    tm = feat_ref.shape[0]

    @pl.when(mb == 0)
    def _init():
        s_ref[...] = jnp.zeros_like(s_ref)

    # Build the q-gated (TM, P3*C) LHS rows in-register (never materialized in
    # HBM):  expanded[m, q[m]*C + c] = feat[m, c]   (1/group-count pre-folded).
    feat = feat_ref[...]                                        # (TM, C) f32
    lane = jax.lax.broadcasted_iota(jnp.int32, (tm, k), 1)      # (TM, K)
    base = q_ref[...] * in_chans                                # (TM, 1) int32
    expanded = jnp.zeros((tm, k), jnp.float32)
    for c in range(in_chans):                                   # C is tiny; unrolled
        expanded += jnp.where(lane == base + c, feat[:, c:c + 1], 0.0)
    expanded = expanded.astype(jnp.bfloat16)

    # Scatter-sum as an MXU matmul, bf16 operands / f32 accumulation.
    # one-hot values {0,1} are exact in bf16.
    rows = jax.lax.broadcasted_iota(jnp.int32, (tn, tm), 0) + nb * tn
    onehot = (rows == dst_ref[...]).astype(jnp.bfloat16)        # (TN, TM)
    s_ref[...] += jnp.dot(onehot, expanded,
                          preferred_element_type=jnp.float32)

    @pl.when(mb == pl.num_programs(1) - 1)
    def _finalize():
        # Projection (TN, K) @ (K, E) plus second encoder pos-MLP layer
        # (first layer + GELU hoisted to glue -> h), fused with the residual.
        # Runs once per row block -> keep it in f32.
        proj = jnp.dot(s_ref[...], w_ref[...],
                       preferred_element_type=jnp.float32)
        pos = jnp.dot(h_ref[...], w2_ref[...],
                      preferred_element_type=jnp.float32) + b2_ref[...]
        out_ref[...] = (proj + pos).astype(out_ref.dtype)


def fused_patch_tokens(feat_scaled, dst, q, w_flat, h_enc, w2, b2,
                       n_out, embed_dim, p3, in_chans,
                       *, tile_m=512, max_tile_n=1024):
    M, C = feat_scaled.shape
    K = p3 * in_chans
    E = embed_dim
    H = w2.shape[0]                          # encoder hidden == embed_dim
    E_pad = _round_up(E, 128)
    H_pad = _round_up(H, 128)

    tile_m = min(tile_m, _round_up(max(M, 8), 8))
    M_pad = _round_up(M, tile_m)

    # >= 2 output-row blocks whenever possible so the parallel axis feeds both
    # TensorCores on v7x; also bounds the resident out / one-hot / S footprint.
    tile_n = min(max_tile_n, _round_up(_cdiv(max(n_out, 8), 2), 8))
    n_blocks = _cdiv(n_out, tile_n)
    N_pad = n_blocks * tile_n

    feat_scaled = _pad_axis(feat_scaled, 0, M_pad)            # zero rows: no-op points
    dst = _pad_axis(dst.reshape(1, M).astype(jnp.int32), 1, M_pad)
    q = _pad_axis(q.reshape(M, 1).astype(jnp.int32), 0, M_pad)
    w_flat = _pad_axis(w_flat, 1, E_pad)                      # (K, E_pad)
    h_enc = _pad_axis(_pad_axis(h_enc, 0, N_pad), 1, H_pad)   # (N_pad, H_pad)
    w2 = _pad_axis(_pad_axis(w2, 0, H_pad), 1, E_pad)
    b2 = _pad_axis(b2.reshape(1, -1), 1, E_pad)

    grid = (n_blocks, M_pad // tile_m)
    kernel = functools.partial(_scatter_tokens_kernel, p3=p3, in_chans=in_chans)

    out = pl.pallas_call(
        kernel,
        out_shape=jax.ShapeDtypeStruct((N_pad, E_pad), jnp.float32),
        grid=grid,
        in_specs=[
            pl.BlockSpec((tile_m, C), lambda n, m: (m, 0)),       # point features
            pl.BlockSpec((1, tile_m), lambda n, m: (0, m)),       # dst slot / point
            pl.BlockSpec((tile_m, 1), lambda n, m: (m, 0)),       # patch-cell idx / point
            pl.BlockSpec((K, E_pad), lambda n, m: (0, 0)),        # flat proj weights
            pl.BlockSpec((tile_n, H_pad), lambda n, m: (n, 0)),   # hoisted enc hidden
            pl.BlockSpec((H_pad, E_pad), lambda n, m: (0, 0)),    # enc w2
            pl.BlockSpec((1, E_pad), lambda n, m: (0, 0)),        # enc b2
        ],
        out_specs=pl.BlockSpec((tile_n, E_pad), lambda n, m: (n, 0)),
        scratch_shapes=[pltpu.VMEM((tile_n, K), jnp.float32)],
        compiler_params=pltpu.CompilerParams(
            dimension_semantics=("parallel", "arbitrary"),
            vmem_limit_bytes=40 * 1024 * 1024),
    )(feat_scaled, dst, q, w_flat, h_enc, w2, b2)
    return out[:n_out, :E]


# ---------------------------------------------------------------------------
# Kernel 2: decoder positional-embedding MLP (Linear(3,H) -> GELU -> Linear).
# First layer = 3 VPU broadcast FMAs; second layer = bf16 MXU / f32 acc.
# ---------------------------------------------------------------------------
def _pos_mlp_kernel(x_ref, w1_ref, b1_ref, w2_ref, b2_ref, out_ref):
    x = x_ref[...]                                   # (TR, 3)
    w1 = w1_ref[...]                                 # (3, H_pad)
    h = b1_ref[...] + x[:, 0:1] * w1[0:1, :]
    for c in range(1, x.shape[1]):                   # contraction of 3 -> VPU FMAs
        h = h + x[:, c:c + 1] * w1[c:c + 1, :]
    h = _gelu_exact(h)
    out_ref[...] = (jnp.dot(h.astype(jnp.bfloat16),
                            w2_ref[...].astype(jnp.bfloat16),
                            preferred_element_type=jnp.float32)
                    + b2_ref[...]).astype(out_ref.dtype)


def pos_embed_mlp(x, w1, b1, w2, b2, *, max_tile_rows=512):
    N, Cin = x.shape
    H = w1.shape[1]
    E = w2.shape[1]
    H_pad = _round_up(H, 128)
    E_pad = _round_up(E, 128)
    # Balanced row tiling avoids computing/writing up to ~2x dead padded rows.
    n_tiles = max(1, _cdiv(N, max_tile_rows))
    tile_rows = _round_up(_cdiv(N, n_tiles), 8)
    N_pad = _round_up(N, tile_rows)

    x = _pad_axis(x, 0, N_pad)
    w1 = _pad_axis(w1, 1, H_pad)
    b1 = _pad_axis(b1, 1, H_pad)
    w2 = _pad_axis(_pad_axis(w2, 0, H_pad), 1, E_pad)
    b2 = _pad_axis(b2, 1, E_pad)

    out = pl.pallas_call(
        _pos_mlp_kernel,
        out_shape=jax.ShapeDtypeStruct((N_pad, E_pad), jnp.float32),
        grid=(N_pad // tile_rows,),
        in_specs=[
            pl.BlockSpec((tile_rows, Cin), lambda i: (i, 0)),
            pl.BlockSpec((Cin, H_pad), lambda i: (0, 0)),
            pl.BlockSpec((1, H_pad), lambda i: (0, 0)),
            pl.BlockSpec((H_pad, E_pad), lambda i: (0, 0)),
            pl.BlockSpec((1, E_pad), lambda i: (0, 0)),
        ],
        out_specs=pl.BlockSpec((tile_rows, E_pad), lambda i: (i, 0)),
        compiler_params=pltpu.CompilerParams(
            dimension_semantics=("parallel",),
            vmem_limit_bytes=40 * 1024 * 1024),
    )(x, w1, b1, w2, b2)
    return out[:N, :E]


# ---------------------------------------------------------------------------
# Forward pass (index prep / hoisted first layer in plain JAX glue, compute in
# the kernels above).
# ---------------------------------------------------------------------------
def patch_embed3d_forward(params, info, *, finetune=False):
    sub = info[1]
    sel_features = sub["sel_features"].astype(jnp.float32)     # (M, C)
    q = sub["coords_rela_query"].astype(jnp.int32)              # (M,)
    inv = sub["patch_unq_inv"].astype(jnp.int32)                # (M,)
    pad_mask = sub["pad_mask"]                                  # (B*P,) bool
    coords = sub["coords_abs_cut"].astype(jnp.float32)          # (B*P, 3)
    B = info["batch_size"]
    P = params["patch_num"]
    Npad = B * P
    Wp = params["proj_weights"]
    P3, C, E = Wp.shape
    M = sel_features.shape[0]

    # Destination slot per point: group k goes to the k-th True slot of pad_mask.
    # Static-size nonzero: no host sync, no recompile when occupancy changes.
    pad_idx = jnp.nonzero(pad_mask, size=Npad, fill_value=0)[0].astype(jnp.int32)
    dst = pad_idx[inv]                                          # (M,)

    # Fold the scatter-mean scaling (1 / group size) into the point features.
    cnt = jnp.zeros((Npad,), jnp.float32).at[dst].add(1.0)
    feat_scaled = sel_features / cnt[dst][:, None]

    # Hoisted encoder pos-MLP first layer + GELU (identical for every kernel
    # grid step; tiny 3-wide contraction stays in XLA).
    h_enc = _gelu_exact(coords @ params["enc_w1"] + params["enc_b1"])

    w_flat = Wp.reshape(P3 * C, E).astype(jnp.float32)

    enc = fused_patch_tokens(feat_scaled, dst, q, w_flat, h_enc,
                             params["enc_w2"], params["enc_b2"],
                             n_out=Npad, embed_dim=E, p3=P3, in_chans=C)
    enc = enc.reshape(B, P, E)

    if finetune:
        return enc

    dec = pos_embed_mlp(coords, params["dec_w1"], params["dec_b1"],
                        params["dec_w2"], params["dec_b2"])
    dec = dec.reshape(B, P, -1)
    # .detach().clone() in PyTorch -> immutable copy here.
    return enc, jnp.array(sel_features), sub["sel_coors"], dec


# ---------------------------------------------------------------------------
# Pure-JAX reference (same semantics) for verification.
# ---------------------------------------------------------------------------
def reference_forward(params, info):
    sub = info[1]
    sel_features = sub["sel_features"]
    q = sub["coords_rela_query"]
    inv = sub["patch_unq_inv"]
    pad_mask = sub["pad_mask"]
    coords = sub["coords_abs_cut"]
    B = info["batch_size"]
    P = params["patch_num"]
    Npad = B * P

    Wg = params["proj_weights"][q]                              # (M, C, E)
    feats = jnp.einsum("mc,mce->me", sel_features, Wg)          # bmm + squeeze
    pad_idx = jnp.nonzero(pad_mask, size=Npad, fill_value=0)[0]
    dst = pad_idx[inv]
    E = feats.shape[1]
    sums = jnp.zeros((Npad, E), jnp.float32).at[dst].add(feats)
    cnts = jnp.zeros((Npad, 1), jnp.float32).at[dst].add(1.0)
    fp = sums / jnp.maximum(cnts, 1.0)                          # scatter-mean + pad zeros

    def mlp(x, w1, b1, w2, b2):
        h = _gelu_exact(x @ w1 + b1)
        return h @ w2 + b2

    enc = fp + mlp(coords, params["enc_w1"], params["enc_b1"],
                   params["enc_w2"], params["enc_b2"])
    dec = mlp(coords, params["dec_w1"], params["dec_b1"],
              params["dec_w2"], params["dec_b2"])
    return (enc.reshape(B, P, -1), sel_features, sub["sel_coors"],
            dec.reshape(B, P, -1))


if __name__ == "__main__":
    # Small, self-consistent shapes.
    patch_size = 2
    patch_num = 8
    in_chans = 4
    embed_dim = 32
    decoder_embed_dim = 16
    batch_size = 2
    M = 20                      # number of input points
    K = 6                       # number of occupied (unique) patches
    Npad = batch_size * patch_num

    key = jax.random.PRNGKey(0)
    keys = jax.random.split(key, 10)

    def init_linear(k, fan_in, fan_out):
        kw, kb = jax.random.split(k)
        bound = 1.0 / (fan_in ** 0.5)
        w = jax.random.uniform(kw, (fan_in, fan_out), jnp.float32, -bound, bound)
        b = jax.random.uniform(kb, (1, fan_out), jnp.float32, -bound, bound)
        return w, b

    enc_w1, enc_b1 = init_linear(keys[0], 3, embed_dim)
    enc_w2, enc_b2 = init_linear(keys[1], embed_dim, embed_dim)
    dec_w1, dec_b1 = init_linear(keys[2], 3, decoder_embed_dim)
    dec_w2, dec_b2 = init_linear(keys[3], decoder_embed_dim, decoder_embed_dim)

    params = dict(
        patch_num=patch_num,
        proj_weights=jnp.ones((patch_size ** 3, in_chans, embed_dim), jnp.float32),
        enc_w1=enc_w1, enc_b1=enc_b1, enc_w2=enc_w2, enc_b2=enc_b2,
        dec_w1=dec_w1, dec_b1=dec_b1, dec_w2=dec_w2, dec_b2=dec_b2,
    )

    sel_features = jax.random.normal(keys[4], (M, in_chans), jnp.float32)
    coords_rela_query = jax.random.randint(keys[5], (M,), 0, patch_size ** 3, jnp.int32)
    patch_unq_inv = jnp.concatenate(
        [jnp.arange(K, dtype=jnp.int32),
         jax.random.randint(keys[6], (M - K,), 0, K, jnp.int32)])
    pad_idx = jnp.sort(jax.random.choice(keys[7], Npad, (K,), replace=False)).astype(jnp.int32)
    pad_mask = jnp.zeros((Npad,), jnp.bool_).at[pad_idx].set(True)
    coords_abs_cut = jax.random.uniform(keys[8], (Npad, 3), jnp.float32)
    sel_coors = jax.random.normal(keys[9], (M, 3), jnp.float32)

    info = {
        "batch_size": batch_size,
        1: dict(sel_features=sel_features,
                coords_rela_query=coords_rela_query,
                patch_unq_inv=patch_unq_inv,
                pad_mask=pad_mask,
                coords_abs_cut=coords_abs_cut,
                sel_coors=sel_coors),
    }

    out = patch_embed3d_forward(params, info)
    out = jax.block_until_ready(out)

    ref = reference_forward(params, info)
    # bf16 MXU operands in the kernels introduce ~1e-3 relative rounding versus
    # the pure-f32 reference, hence the 3e-2 tolerances.
    for got, want in zip(out, ref):
        assert got.shape == want.shape and got.dtype == want.dtype
        assert jnp.allclose(got, want, rtol=3e-2, atol=3e-2), (
            float(jnp.max(jnp.abs(got - want))))

    print("KERNEL_OK")
</pallas_src>

<mosaic_0001>
module attributes {stable_mosaic.version = 11 : i64} {
  func.func @_scatter_tokens_kernel(%arg0: i32, %arg1: i32, %arg2: memref<24x4xf32, #tpu.memory_space<vmem>>, %arg3: memref<1x24xi32, #tpu.memory_space<vmem>>, %arg4: memref<24x1xi32, #tpu.memory_space<vmem>>, %arg5: memref<32x128xf32, #tpu.memory_space<vmem>>, %arg6: memref<8x128xf32, #tpu.memory_space<vmem>>, %arg7: memref<128x128xf32, #tpu.memory_space<vmem>>, %arg8: memref<1x128xf32, #tpu.memory_space<vmem>>, %arg9: memref<8x128xf32, #tpu.memory_space<vmem>>, %arg10: memref<8x32xf32, #tpu.memory_space<vmem>>) attributes {dimension_semantics = [#tpu.dimension_semantics<parallel>, #tpu.dimension_semantics<arbitrary>], iteration_bounds = array<i64: 2, 1>, scalar_prefetch = 0 : i64, scratch_operands = 1 : i64, tpu.core_type = #tpu.core_type<tc>, window_params = [{transform_indices = @transform_0, window_bounds = array<i64: 24, 4>}, {transform_indices = @transform_1, window_bounds = array<i64: 1, 24>}, {transform_indices = @transform_2, window_bounds = array<i64: 24, 1>}, {pipeline_mode = #tpu.pipeline_mode<synchronous>, transform_indices = @transform_3, window_bounds = array<i64: 32, 128>}, {transform_indices = @transform_4, window_bounds = array<i64: 8, 128>}, {pipeline_mode = #tpu.pipeline_mode<synchronous>, transform_indices = @transform_5, window_bounds = array<i64: 128, 128>}, {pipeline_mode = #tpu.pipeline_mode<synchronous>, transform_indices = @transform_6, window_bounds = array<i64: 1, 128>}, {transform_indices = @transform_7, window_bounds = array<i64: 8, 128>}]} {
    %c0_i32 = arith.constant 0 : i32
    %0 = arith.cmpi eq, %arg1, %c0_i32 : i32
    %1 = arith.extui %0 : i1 to i32
    %c0_i32_0 = arith.constant 0 : i32
    %2 = arith.cmpi ne, %1, %c0_i32_0 : i32
    scf.if %2 {
      %cst_18 = arith.constant 0.000000e+00 : f32
      %67 = vector.broadcast %cst_18 : f32 to vector<8x32xf32>
      %c0_19 = arith.constant 0 : index
      %c0_20 = arith.constant 0 : index
      %68 = vector.load %arg10[%c0_19, %c0_20] : memref<8x32xf32, #tpu.memory_space<vmem>>, vector<8x32xf32>
      tpu.vector_store %arg10[%c0_19, %c0_20], %67 {strides = array<i32>} : memref<8x32xf32, #tpu.memory_space<vmem>>, vector<8x32xf32>,
    } else {
    }
    %c0 = arith.constant 0 : index
    %c0_1 = arith.constant 0 : index
    %3 = vector.load %arg2[%c0, %c0_1] : memref<24x4xf32, #tpu.memory_space<vmem>>, vector<24x4xf32>
    %4 = tpu.iota {dimensions = array<i32: 1>} : vector<24x32xi32>
    %c0_2 = arith.constant 0 : index
    %c0_3 = arith.constant 0 : index
    %5 = vector.load %arg4[%c0_2, %c0_3] : memref<24x1xi32, #tpu.memory_space<vmem>>, vector<24x1xi32>
    %c4_i32 = arith.constant 4 : i32
    %6 = vector.broadcast %c4_i32 : i32 to vector<24x1xi32>
    %7 = arith.muli %5, %6 : vector<24x1xi32>
    %cst = arith.constant 0.000000e+00 : f32
    %8 = vector.broadcast %cst : f32 to vector<24x32xf32>
    %c0_i32_4 = arith.constant 0 : i32
    %9 = vector.broadcast %c0_i32_4 : i32 to vector<24x1xi32>
    %10 = arith.addi %7, %9 : vector<24x1xi32>
    %11 = vector.broadcast %10 : vector<24x1xi32> to vector<24x32xi32>
    %12 = arith.cmpi eq, %4, %11 : vector<24x32xi32>
    %13 = vector.extract_strided_slice %3 {offsets = [0, 0], sizes = [24, 1], strides = [1, 1]} : vector<24x4xf32> to vector<24x1xf32>
    %cst_5 = arith.constant 0.000000e+00 : f32
    %14 = vector.shape_cast %13 : vector<24x1xf32> to vector<24x1xf32>
    %15 = vector.broadcast %14 : vector<24x1xf32> to vector<24x32xf32>
    %16 = vector.broadcast %cst_5 : f32 to vector<24x32xf32>
    %17 = arith.select %12, %15, %16 : vector<24x32xi1>, vector<24x32xf32>
    %18 = arith.addf %8, %17 : vector<24x32xf32>
    %c1_i32 = arith.constant 1 : i32
    %19 = vector.broadcast %c1_i32 : i32 to vector<24x1xi32>
    %20 = arith.addi %7, %19 : vector<24x1xi32>
    %21 = vector.broadcast %20 : vector<24x1xi32> to vector<24x32xi32>
    %22 = arith.cmpi eq, %4, %21 : vector<24x32xi32>
    %23 = vector.extract_strided_slice %3 {offsets = [0, 1], sizes = [24, 1], strides = [1, 1]} : vector<24x4xf32> to vector<24x1xf32>
    %cst_6 = arith.constant 0.000000e+00 : f32
    %24 = vector.shape_cast %23 : vector<24x1xf32> to vector<24x1xf32>
    %25 = vector.broadcast %24 : vector<24x1xf32> to vector<24x32xf32>
    %26 = vector.broadcast %cst_6 : f32 to vector<24x32xf32>
    %27 = arith.select %22, %25, %26 : vector<24x32xi1>, vector<24x32xf32>
    %28 = arith.addf %18, %27 : vector<24x32xf32>
    %c2_i32 = arith.constant 2 : i32
    %29 = vector.broadcast %c2_i32 : i32 to vector<24x1xi32>
    %30 = arith.addi %7, %29 : vector<24x1xi32>
    %31 = vector.broadcast %30 : vector<24x1xi32> to vector<24x32xi32>
    %32 = arith.cmpi eq, %4, %31 : vector<24x32xi32>
    %33 = vector.extract_strided_slice %3 {offsets = [0, 2], sizes = [24, 1], strides = [1, 1]} : vector<24x4xf32> to vector<24x1xf32>
    %cst_7 = arith.constant 0.000000e+00 : f32
    %34 = vector.shape_cast %33 : vector<24x1xf32> to vector<24x1xf32>
    %35 = vector.broadcast %34 : vector<24x1xf32> to vector<24x32xf32>
    %36 = vector.broadcast %cst_7 : f32 to vector<24x32xf32>
    %37 = arith.select %32, %35, %36 : vector<24x32xi1>, vector<24x32xf32>
    %38 = arith.addf %28, %37 : vector<24x32xf32>
    %c3_i32 = arith.constant 3 : i32
    %39 = vector.broadcast %c3_i32 : i32 to vector<24x1xi32>
    %40 = arith.addi %7, %39 : vector<24x1xi32>
    %41 = vector.broadcast %40 : vector<24x1xi32> to vector<24x32xi32>
    %42 = arith.cmpi eq, %4, %41 : vector<24x32xi32>
    %43 = vector.extract_strided_slice %3 {offsets = [0, 3], sizes = [24, 1], strides = [1, 1]} : vector<24x4xf32> to vector<24x1xf32>
    %cst_8 = arith.constant 0.000000e+00 : f32
    %44 = vector.shape_cast %43 : vector<24x1xf32> to vector<24x1xf32>
    %45 = vector.broadcast %44 : vector<24x1xf32> to vector<24x32xf32>
    %46 = vector.broadcast %cst_8 : f32 to vector<24x32xf32>
    %47 = arith.select %42, %45, %46 : vector<24x32xi1>, vector<24x32xf32>
    %48 = arith.addf %38, %47 : vector<24x32xf32>
    %49 = arith.truncf %48 : vector<24x32xf32> to vector<24x32xbf16>
    %50 = tpu.iota {dimensions = array<i32: 0>} : vector<8x24xi32>
    %c8_i32 = arith.constant 8 : i32
    %51 = arith.muli %arg0, %c8_i32 : i32
    %52 = vector.broadcast %51 : i32 to vector<8x24xi32>
    %53 = arith.addi %50, %52 : vector<8x24xi32>
    %c0_9 = arith.constant 0 : index
    %c0_10 = arith.constant 0 : index
    %54 = vector.load %arg3[%c0_9, %c0_10] : memref<1x24xi32, #tpu.memory_space<vmem>>, vector<1x24xi32>
    %55 = vector.broadcast %54 : vector<1x24xi32> to vector<8x24xi32>
    %56 = arith.cmpi eq, %53, %55 : vector<8x24xi32>
    %57 = arith.extui %56 : vector<8x24xi1> to vector<8x24xi32>
    %58 = arith.sitofp %57 : vector<8x24xi32> to vector<8x24xf32>
    %59 = arith.truncf %58 : vector<8x24xf32> to vector<8x24xbf16>
    %c0_11 = arith.constant 0 : index
    %c0_12 = arith.constant 0 : index
    %60 = vector.load %arg10[%c0_11, %c0_12] : memref<8x32xf32, #tpu.memory_space<vmem>>, vector<8x32xf32>
    %cst_13 = arith.constant dense<0.000000e+00> : vector<8x32xf32>
    %61 = tpu.matmul %59, %49, %cst_13 {dimension_numbers = #tpu.dot_dimension_numbers<[1], [0], [0], [1], [0, 0, 1, 1], [], []>} : vector<8x24xbf16>, vector<24x32xbf16>, vector<8x32xf32> -> vector<8x32xf32>
    %62 = arith.addf %60, %61 : vector<8x32xf32>
    %c0_14 = arith.constant 0 : index
    %c0_15 = arith.constant 0 : index
    %63 = vector.load %arg10[%c0_14, %c0_15] : memref<8x32xf32, #tpu.memory_space<vmem>>, vector<8x32xf32>
    tpu.vector_store %arg10[%c0_14, %c0_15], %62 {strides = array<i32>} : memref<8x32xf32, #tpu.memory_space<vmem>>, vector<8x32xf32>,
    %c0_i32_16 = arith.constant 0 : i32
    %64 = arith.cmpi eq, %arg1, %c0_i32_16 : i32
    %65 = arith.extui %64 : i1 to i32
    %c0_i32_17 = arith.constant 0 : i32
    %66 = arith.cmpi ne, %65, %c0_i32_17 : i32
    scf.if %66 {
      %c0_18 = arith.constant 0 : index
      %c0_19 = arith.constant 0 : index
      %67 = vector.load %arg10[%c0_18, %c0_19] : memref<8x32xf32, #tpu.memory_space<vmem>>, vector<8x32xf32>
      %c0_20 = arith.constant 0 : index
      %c0_21 = arith.constant 0 : index
      %68 = vector.load %arg5[%c0_20, %c0_21] : memref<32x128xf32, #tpu.memory_space<vmem>>, vector<32x128xf32>
      %cst_22 = arith.constant dense<0.000000e+00> : vector<8x128xf32>
      %69 = tpu.matmul %67, %68, %cst_22 {dimension_numbers = #tpu.dot_dimension_numbers<[1], [0], [0], [1], [0, 0, 1, 1], [], []>} : vector<8x32xf32>, vector<32x128xf32>, vector<8x128xf32> -> vector<8x128xf32>
      %c0_23 = arith.constant 0 : index
      %c0_24 = arith.constant 0 : index
      %70 = vector.load %arg6[%c0_23, %c0_24] : memref<8x128xf32, #tpu.memory_space<vmem>>, vector<8x128xf32>
      %c0_25 = arith.constant 0 : index
      %c0_26 = arith.constant 0 : index
      %71 = vector.load %arg7[%c0_25, %c0_26] : memref<128x128xf32, #tpu.memory_space<vmem>>, vector<128x128xf32>
      %cst_27 = arith.constant dense<0.000000e+00> : vector<8x128xf32>
      %72 = tpu.matmul %70, %71, %cst_27 {dimension_numbers = #tpu.dot_dimension_numbers<[1], [0], [0], [1], [0, 0, 1, 1], [], []>} : vector<8x128xf32>, vector<128x128xf32>, vector<8x128xf32> -> vector<8x128xf32>
      %c0_28 = arith.constant 0 : index
      %c0_29 = arith.constant 0 : index
      %73 = vector.load %arg8[%c0_28, %c0_29] : memref<1x128xf32, #tpu.memory_space<vmem>>, vector<1x128xf32>
      %74 = vector.broadcast %73 : vector<1x128xf32> to vector<8x128xf32>
      %75 = arith.addf %72, %74 : vector<8x128xf32>
      %76 = arith.addf %69, %75 : vector<8x128xf32>
      %c0_30 = arith.constant 0 : index
      %c0_31 = arith.constant 0 : index
      %77 = vector.load %arg9[%c0_30, %c0_31] : memref<8x128xf32, #tpu.memory_space<vmem>>, vector<8x128xf32>
      tpu.vector_store %arg9[%c0_30, %c0_31], %76 {strides = array<i32>} : memref<8x128xf32, #tpu.memory_space<vmem>>, vector<8x128xf32>,
    } else {
    }
    return
  }
  func.func @transform_0(%arg0: i32, %arg1: i32) -> (i32, i32) {
    %c0_i32 = arith.constant 0 : i32
    %c0_i32_0 = arith.constant 0 : i32
    return %arg1, %c0_i32 : i32, i32
  }
  func.func @transform_1(%arg0: i32, %arg1: i32) -> (i32, i32) {
    %c0_i32 = arith.constant 0 : i32
    %c0_i32_0 = arith.constant 0 : i32
    return %c0_i32, %arg1 : i32, i32
  }
  func.func @transform_2(%arg0: i32, %arg1: i32) -> (i32, i32) {
    %c0_i32 = arith.constant 0 : i32
    %c0_i32_0 = arith.constant 0 : i32
    return %arg1, %c0_i32 : i32, i32
  }
  func.func @transform_3(%arg0: i32, %arg1: i32) -> (i32, i32) {
    %c0_i32 = arith.constant 0 : i32
    %c0_i32_0 = arith.constant 0 : i32
    %c0_i32_1 = arith.constant 0 : i32
    return %c0_i32, %c0_i32_0 : i32, i32
  }
  func.func @transform_4(%arg0: i32, %arg1: i32) -> (i32, i32) {
    %c0_i32 = arith.constant 0 : i32
    %c0_i32_0 = arith.constant 0 : i32
    return %arg0, %c0_i32 : i32, i32
  }
  func.func @transform_5(%arg0: i32, %arg1: i32) -> (i32, i32) {
    %c0_i32 = arith.constant 0 : i32
    %c0_i32_0 = arith.constant 0 : i32
    %c0_i32_1 = arith.constant 0 : i32
    return %c0_i32, %c0_i32_0 : i32, i32
  }
  func.func @transform_6(%arg0: i32, %arg1: i32) -> (i32, i32) {
    %c0_i32 = arith.constant 0 : i32
    %c0_i32_0 = arith.constant 0 : i32
    %c0_i32_1 = arith.constant 0 : i32
    return %c0_i32, %c0_i32_0 : i32, i32
  }
  func.func @transform_7(%arg0: i32, %arg1: i32) -> (i32, i32) {
    %c0_i32 = arith.constant 0 : i32
    %c0_i32_0 = arith.constant 0 : i32
    return %arg0, %c0_i32 : i32, i32
  }
}

</mosaic_0001>

<bundles_post_ra>
// kernel: tpu_custom_call.1
= control target key start
LH: loop header
LB: loop body
LE: loop exit
PB: predicated region body
PF: predicated region fallthrough
CT: control target
= control target key end

     0   :  { %12 = vsyncpa [#allocation4], 0  ;;  %s1192_s0 = inlined_call_operand.vmem [shape: f32[24,4], index: 0, kind: input, shape index: {}]   ;;  %s1193_s1 = inlined_call_operand.vmem [shape: s32[1,24], index: 1, kind: input, shape index: {}]   ;;  %s1194_s2 = inlined_call_operand.vmem [shape: s32[24,1], index: 2, kind: input, shape index: {}]   ;;  %s1195_s3 = inlined_call_operand.vmem [shape: f32[32,128], index: 3, kind: input, shape index: {}]   ;;  %s1196_s4 = inlined_call_operand.vmem [shape: f32[16,128], index: 4, kind: input, shape index: {}]   ;;  %s1197_s5 = inlined_call_operand.hbm [shape: f32[128,128], index: 5, kind: input, shape index: {}]   ;;  %s1198_s6 = inlined_call_operand.vmem [shape: f32[1,128], index: 6, kind: input, shape index: {}]   ;;  %s1199_s7 = inlined_call_operand.hbm [shape: f32[16,128], index: 7, kind: output, shape index: {}]  }
   0x1   :  { %13 = vsyncpa [#allocation5], 0 }
   0x2   :  { %15 = vsyncpa [#allocation5 + $0x1], 0  ;;  %s1032_s24 = smov 0   ;;  %s1034_s25 = smov 0  }
   0x3   :  { %s1036_s26 = smov 0   ;;  %s1038_s27 = smov 0  }
   0x4   :  { %s1040_s28 = smov 0   ;;  %s1042_s29 = smov 0  }
   0x5 LB: > { %s759_s30 = sadd.s32 4294967295, %s982_s29   ;;  %s760_s8 = sadd.s32 4294967294, %s982_s29   ;;  %s982_s29 = sphi %s1042_s29, %s21_s29   ;;  %s978_s28 = sphi %s1040_s28, %s1206_s28   ;;  %s974_s27 = sphi %s1038_s27, %s1205_s27   ;;  %s970_s26 = sphi %s1036_s26, %s1204_s26   ;;  %s966_s25 = sphi %s1034_s25, %s1203_s25   ;;  %s962_s24 = sphi %s1032_s24, %s1202_s24  }
   0x6   : > { %s33_s9 = sadd.s32 1, %s978_s28  ;;  %s207_s10 = sadd.s32 1, %s970_s26 }
   0x7   : > { %p35_p0 = scmp.ge.s32.totalorder %s33_s9, 2  ;;  %p217_p1 = scmp.ne.s32.totalorder %s970_s26, %s966_s25 }
   0x8   : > { %p218_p2 = scmp.eq.s32.totalorder %s759_s30, 1  ;;  %p223_p3 = scmp.ne.s32.totalorder %s966_s25, %s962_s24 }
   0x9   : > { %s1208_s9 = smov (%p35_p0, %s33_s9), 0  ;;  %p224_p5 = scmp.eq.s32.totalorder %s760_s8, 1 }
   0xa   : > { %p1072_p4 = por %p218_p2, %p217_p1  ;;  %s204_s12 = ssub.s32 %s978_s28, %s1208_s9 }
   0xb   : > { %p761_p6 = scmp.ge.s32.totalorder %s982_s29, 1  ;;  %p205_p7 = scmp.eq.s32.totalorder %s204_s12, 0 }
   0xc   : > { %p1079_p8 = por %p224_p5, %p223_p3  ;;  %p231_p9 = scmp.lt.s32.totalorder %s982_s29, 3 }
   0xd   : > { %s1085_s14 = scalar_select %p205_p7, %s970_s26, %s207_s10  }
   0xe   : > { %p232_p10 = pnand %p761_p6, %p231_p9  ;;  %p793_p11 = scmp.eq.s32.totalorder %s759_s30, 0 }
   0xf   : > { %s269_s17 = sshll.u32 %s1197_s5, 4  ;;  %s984_s18 = smov [#allocation3]   ;;  %s270_s17 = int_to_ptr.hbm [resolvable:$true] %s269_s17 }
  0x10   : > { %p785_p12 = pneg %p232_p10  ;;  %s271_s19 = sshll.u32 %s984_s18, 4  ;;  %s272_s19 = int_to_ptr.vmem [resolvable:$true] %s271_s19 }
  0x11   : > { %s985_s20 = smov 128   ;;  %s986_s21 = smov 8  }
  0x12   : > { %p786_p13 = pnand %p793_p11, %p785_p12  ;;  %297 = sbr.rel (%p232_p10) target bundleno = 491 (0x1eb), region = 48 }
  0x14   : > { %788 = dma.hbm_to_vmem [thread:$0]  (!%p786_p13), %s270_s17, 2048, %s272_s19, [#allocation4], %s985_s20, %s985_s20, %s986_s21  }
  0x17   : > { %953 = dma.done.wait (%p793_p11), [#allocation4], 2048  }
  0x18   : > { %955 = vsyncadd (%p793_p11), [#allocation4], 4294965248  ;;  %v987_v0 = vmov 1   ;;  %v988_v1 = vmov 0   ;;  %v989_v2 = vmov 2   ;;  %v370_v3 = vld [vmem:[%s1192_s0 + $0x10] sm:$0xff]  ;;  %v371_v28 = vlaneseq }
  0x19   : > { %859 = vset.pattern.permute.xlu0 %v987_v0  ;;  %852 = vset.pattern.permute.xlu1 %v988_v1  ;;  %v369_v4 = vld [vmem:[%s1192_s0 + $0x8] sm:$0xff]  ;;  %v375_v5 = vld [vmem:[%s1194_s2 + $0x10] sm:$0xff]  ;;  %v373_v8 = vld [vmem:[%s1194_s2] sm:$0xff]  ;;  %v990_v15 = vmov 3   ;;  %vm529_vm4 = vcmask 1043456   ;;  %vm366_vm5 = vcmask 261120  }
  0x1a   : > { %854 = vset.pattern.permute.xlu2 %v989_v2  ;;  %403 = vperm.xlu1 %852, %v370_v3   ;;  %v378_v6 = vmul.u32 4, %v375_v5  ;;  %v374_v9 = vld [vmem:[%s1194_s2 + $0x8] sm:$0xff]  ;;  %v376_v11 = vmul.u32 4, %v373_v8  ;;  %v368_v17 = vld [vmem:[%s1192_s0] sm:$0xff]  ;;  %v1110_v29 = vand.u32 127, %v371_v28  ;;  %v572_v50 = vld [vmem:[#allocation3 + $0x70] sm:$0xff] }
  0x1b   : > { %432 = vperm.xlu0 %859, %v369_v4   ;;  %469 = vperm.xlu2 %854, %v370_v3   ;;  %v377_v12 = vmul.u32 4, %v374_v9  ;;  %v573_v49 = vld [vmem:[#allocation3 + $0x78] sm:$0xff]  ;;  %v991_v51 = vmov 0.0   ;;  %v571_v52 = vld [vmem:[#allocation3 + $0x68] sm:$0xff]  ;;  %v570_v54 = vld [vmem:[#allocation3 + $0x60] sm:$0xff]  ;;  %s771_s21 = sshll.u32 %s974_s27, 3 }
  0x1c   : > { %v447_v7 = vadd.s32 2, %v378_v6  ;;  %v414_v10 = vadd.s32 1, %v378_v6  ;;  %v480_v13 = vadd.s32 3, %v378_v6  ;;  %v412_v16 = vadd.s32 1, %v376_v11  ;;  %578 = vmatpush.msra.mxu1 %v573_v49  ;;  %367 = vst.msk [vmem:[#allocation2] sm:$0xff] %vm366_vm5, %v991_v51  ;;  %v569_v56 = vld [vmem:[#allocation3 + $0x58] sm:$0xff]  ;;  %s633_s18 = scalar_lea.hbm %s1199_s7, %s771_s21 }
  0x1d   : > { %v413_v14 = vadd.s32 1, %v377_v12  ;;  %v445_v18 = vadd.s32 2, %v376_v11  ;;  %v446_v19 = vadd.s32 2, %v377_v12  ;;  %v478_v20 = vadd.s32 3, %v376_v11  ;;  %v568_v58 = vld [vmem:[#allocation3 + $0x50] sm:$0xff]  ;;  %v567_v59 = vld [vmem:[#allocation3 + $0x48] sm:$0xff] }
  0x1e   : > { %v479_v21 = vadd.s32 3, %v377_v12  ;;  %579 = vmatpush.msra.mxu1 %v572_v50  ;;  %v566_v60 = vld [vmem:[#allocation3 + $0x40] sm:$0xff]  ;;  %v514_v63 = vshrl.u32 %v371_v28, 7  ;;  %v868_v8 = vld [vmem:[%s1193_s1] ss:$0 sm:$0xff]  ;;  %vm525_vm15 = vcmask 195584  }
  0x1f   : > { %p357_p0 = scmp.lt.s32.totalorder %s974_s27, 1  ;;  %v555_v28 = vld [vmem:[%s1195_s3 + $0x10] sm:$0xff]  ;;  %s637_s22 = sshll.u32 %s633_s18, 4  ;;  %s638_s22 = int_to_ptr.hbm [resolvable:$true] %s637_s22 }
  0x20   : > { %580 = vmatpush.msra.mxu1 %v571_v52 }
  0x21   : > { %s358_s30 = scalar_select %p357_p0, %s974_s27, 1 }
  0x22   : > { %853 = vset.pattern.permute.xlu1 %v987_v0  ;;  %581 = vmatpush.msra.mxu1 %v570_v54 }
  0x23   : > { %860 = vset.pattern.permute.xlu0 %v988_v1  ;;  %436 = vperm.xlu1 %853, %v370_v3   ;;  %s770_s16 = sshll.u32 %s358_s30, 3  ;;  %s339_s30 = sand.u32 1, %s966_s25  }
  0x24   : > { %386 = vperm.xlu0 %860, %v378_v6   ;;  %856 = vset.pattern.permute.xlu2 %v988_v1  ;;  %s360_s8 = scalar_lea.vmem %s1196_s4, %s770_s16  ;;  %s769_s10 = sshll.u32 %s339_s30, 3 }
  0x25   : > { %455 = vperm.xlu2 %856, %v447_v7   ;;  %582 = vmatpush.msra.mxu1 %v569_v56  ;;  %s341_s19 = scalar_lea.vmem [#allocation6], %s769_s10  ;;  %s623_s23 = scalar_lea.sflag [#allocation5], %s339_s30 }
  0x26   : > { %s635_s20 = sshll.u32 %s341_s19, 4  ;;  %s636_s20 = int_to_ptr.vmem [resolvable:$true] %s635_s20 }
  0x27   : > { %583 = vmatpush.msra.mxu1 %v568_v58 }
  0x29   : > { %584 = vmatpush.msra.mxu1 %v567_v59 }
  0x2b   : > { %855 = vset.pattern.permute.xlu1 %v988_v1  ;;  %585 = vmatpush.msra.mxu1 %v566_v60 }
  0x2c   : > { %422 = vperm.xlu0 %860, %v414_v10   ;;  %380 = vperm.xlu1 %855, %v376_v11  }
  0x2d   : > { %383 = vperm.xlu2 %856, %v377_v12  }
  0x34   : > { %488 = vperm.xlu0 %860, %v480_v13   ;;  %419 = vperm.xlu1 %855, %v413_v14  }
  0x35   : > { %857 = vset.pattern.permute.xlu2 %v990_v15 }
  0x36   : > { %502 = vperm.xlu2 %857, %v370_v3  }
  0x3c   : > { %416 = vperm.xlu0 %860, %v412_v16   ;;  %398 = vperm.xlu1 %855, %v369_v4  }
  0x3e   : > { %858 = vset.pattern.permute.xlu2 %v987_v0  ;;  %v516_v0 = vstv %s771_s21  ;;  %s920_s21 = scalar_lea.hbm %s1199_s7, 16 }
  0x3f   : > { %428 = vperm.xlu2 %858, %v368_v17   ;;  %v517_v7 = vadd.s32 %v516_v0, %v514_v63 }
  0x41   : > { %vm520_vm13 = vcmp.eq.s32.totalorder %v517_v7, %v868_v8 }
  0x44   : > { %393 = vperm.xlu0 %860, %v368_v17   ;;  %449 = vperm.xlu1 %855, %v445_v18  }
  0x47   : > { %861 = vset.pattern.permute.xlu2 %v988_v1 }
  0x48   : > { %452 = vperm.xlu2 %861, %v446_v19  }
  0x4c   : > { %482 = vperm.xlu0 %860, %v478_v20   ;;  %862 = vset.pattern.permute.xlu1 %v989_v2  ;;  %v772_v20 = vsel %vm520_vm13, 1.0, %v991_v51 }
  0x4d   : > { %461 = vperm.xlu1 %862, %v368_v17  }
  0x50   : > { %863 = vset.pattern.permute.xlu2 %v989_v2 }
  0x51   : > { %465 = vperm.xlu2 %863, %v369_v4  }
  0x54   : > { %867 = vset.pattern.permute.xlu0 %v990_v15 }
  0x55   : > { %864 = vset.pattern.permute.xlu1 %v988_v1 }
  0x56   : > { %485 = vperm.xlu1 %864, %v479_v21  }
  0x59   : > { %865 = vset.pattern.permute.xlu2 %v990_v15 }
  0x5a   : > { %494 = vperm.xlu2 %865, %v368_v17  }
  0x5e   : > { %866 = vset.pattern.permute.xlu1 %v990_v15 }
  0x5f   : > { %498 = vperm.xlu1 %866, %v369_v4  }
  0x75   : > { %v470_v22 = vpop.permute.xlu2 %469 }
  0x7f   : > { %v456_v25 = vpop.permute.xlu2 %455 }
  0x80   : > { %vm459_vm2 = vcmp.eq.s32.totalorder %v1110_v29, %v456_v25  ;;  %v563_v25 = vld [vmem:[#allocation3 + $0x28] sm:$0xff] }
  0x81   : > { %v474_v36 = vsel %vm459_vm2, %v470_v22, 0.0  ;;  %v523_v22 = vpack.c.bf16 %v772_v20, %v772_v20 }
  0x87   : > { %v384_v30 = vpop.permute.xlu2 %383 }
  0x88   : > { %vm389_vm6 = vcmp.eq.s32.totalorder %v1110_v29, %v384_v30  ;;  %v554_v30 = vld [vmem:[%s1195_s3 + $0x8] sm:$0xff] }
  0x8c   : > { %v404_v23 = vpop.permute.xlu1 %403 }
  0x8d   : > { %v1108_v24 = vpop.permute.xlu0 %432 }
  0x90   : > { %v503_v38 = vpop.permute.xlu2 %502 }
  0x95   : > { %v437_v26 = vpop.permute.xlu1 %436 }
  0x96   : > { %v387_v27 = vpop.permute.xlu0 %386 }
  0x97   : > { %vm390_vm0 = vcmp.eq.s32.totalorder %v1110_v29, %v387_v27  ;;  %v562_v27 = vld [vmem:[#allocation3 + $0x20] sm:$0xff] }
  0x98   : > { %v408_v34 = vsel %vm390_vm0, %v404_v23, 0.0  ;;  %v565_v23 = vld [vmem:[#allocation3 + $0x38] sm:$0xff] }
  0x99   : > { %v429_v46 = vpop.permute.xlu2 %428  ;;  %586 = vmatpush.msra.mxu1 %v565_v23 }
  0x9e   : > { %v423_v31 = vpop.permute.xlu0 %422  ;;  %v381_v32 = vpop.permute.xlu1 %380 }
  0x9f   : > { %vm426_vm1 = vcmp.eq.s32.totalorder %v1110_v29, %v423_v31  ;;  %vm388_vm7 = vcmp.eq.s32.totalorder %v1110_v29, %v381_v32  ;;  %v560_v31 = vld [vmem:[#allocation3 + $0x10] sm:$0xff]  ;;  %v553_v32 = vld [vmem:[%s1195_s3] sm:$0xff] }
  0xa0   : > { %v441_v33 = vsel %vm426_vm1, %v437_v26, 0.0  ;;  %v556_v26 = vld [vmem:[%s1195_s3 + $0x18] sm:$0xff] }
  0xa1   : > { %v444_v35 = vadd.f32 %v441_v33, %v408_v34  ;;  %613 = vmatpush.msra.mxu2 %v556_v26  ;;  %v559_v33 = vld [vmem:[#allocation3 + $0x8] sm:$0xff]  ;;  %v558_v34 = vld [vmem:[#allocation3] sm:$0xff] }
  0xa2   : > { %v453_v53 = vpop.permute.xlu2 %452 }
  0xa3   : > { %v477_v40 = vadd.f32 %v474_v36, %v444_v35  ;;  %vm458_vm10 = vcmp.eq.s32.totalorder %v1110_v29, %v453_v53  ;;  %614 = vmatpush.msra.mxu2 %v555_v28  ;;  %v557_v35 = vld [vmem:[%s360_s8] sm:$0xff]  ;;  %s914_s8 = sshra.s32 %s638_s22, 4  ;;  %s915_s8 = int_to_ptr.hbm [resolvable:$true] %s914_s8 }
  0xa4   : > { %v524_v36 = vld [vmem:[#allocation2] sm:$0xff]  ;;  %s916_s12 = scalar_lea.hbm %s915_s8, 8  ;;  %p921_p5 = scmp.lt.s32.totalorder %s915_s8, %s1199_s7 }
  0xa5   : > { %615 = vmatpush.msra.mxu2 %v554_v30  ;;  %p917_p1 = scmp.ne.s32.totalorder %s915_s8, %s916_s12  ;;  %p922_p6 = scmp.lt.s32.totalorder %s920_s21, %s916_s12 }
  0xa6   : > { %v489_v37 = vpop.permute.xlu0 %488  ;;  %v420_v39 = vpop.permute.xlu1 %419 }
  0xa7   : > { %vm492_vm3 = vcmp.eq.s32.totalorder %v1110_v29, %v489_v37  ;;  %vm425_vm8 = vcmp.eq.s32.totalorder %v1110_v29, %v420_v39  ;;  %616 = vmatpush.msra.mxu2 %v553_v32  ;;  %p918_p2 = pnand %p917_p1, %p1072_p4  ;;  %p923_p7 = por %p922_p6, %p921_p5 }
  0xa8   : > { %v507_v41 = vsel %vm492_vm3, %v503_v38, 0.0  ;;  %v440_v3 = vsel %vm425_vm8, %v1108_v24, 0.0  ;;  %v564_v24 = vld [vmem:[#allocation3 + $0x30] sm:$0xff] }
  0xa9   : > { %v510_v42 = vadd.f32 %v507_v41, %v477_v40  ;;  %587 = vmatpush.msra.mxu1 %v564_v24  ;;  %v869_v41 = vld [vmem:[%s1198_s6] ss:$0 sm:$0xff]  ;;  %p919_p3 = pneg %p918_p2 }
  0xab   : > { %v512_v43 = vpack.c.bf16 %v510_v42, %v510_v42  ;;  %v466_v61 = vpop.permute.xlu2 %465  ;;  %588 = vmatpush.msra.mxu1 %v563_v25  ;;  %p924_p9 = pnand %p923_p7, %p919_p3 }
  0xac   : > { %v473_v11 = vsel %vm458_vm10, %v466_v61, 0.0 }
  0xad   : > { %v531_v44 = vsel %vm529_vm4, %v512_v43, 0  ;;  %589 = vmatpush.msra.mxu1 %v562_v27 }
  0xae   : > { %539 = vmatpush.bf16.msra.mxu0 %v531_v44  ;;  %v399_v45 = vpop.permute.xlu1 %398  ;;  %v417_v48 = vpop.permute.xlu0 %416 }
  0xaf   : > { %vm424_vm9 = vcmp.eq.s32.totalorder %v1110_v29, %v417_v48  ;;  %v407_v1 = vsel %vm389_vm6, %v399_v45, 0.0 }
  0xb0   : > { %v439_v4 = vsel %vm424_vm9, %v429_v46, 0.0  ;;  %v443_v9 = vadd.f32 %v440_v3, %v407_v1 }
  0xb2   : > { %v476_v14 = vadd.f32 %v473_v11, %v443_v9 }
  0xb4   : > { %v495_v12 = vpop.permute.xlu2 %494 }
  0xb6   : > { %v450_v47 = vpop.permute.xlu1 %449  ;;  %v394_v57 = vpop.permute.xlu0 %393 }
  0xb7   : > { %v406_v2 = vsel %vm388_vm7, %v394_v57, 0.0  ;;  %vm457_vm11 = vcmp.eq.s32.totalorder %v1110_v29, %v450_v47 }
  0xb8   : > { %v442_v10 = vadd.f32 %v439_v4, %v406_v2 }
  0xbe   : > { %v483_v5 = vpop.permute.xlu0 %482 }
  0xbf   : > { %v462_v55 = vpop.permute.xlu1 %461  ;;  %vm490_vm12 = vcmp.eq.s32.totalorder %v1110_v29, %v483_v5 }
  0xc0   : > { %v472_v6 = vsel %vm457_vm11, %v462_v55, 0.0  ;;  %v505_v16 = vsel %vm490_vm12, %v495_v12, 0.0 }
  0xc1   : > { %v475_v13 = vadd.f32 %v472_v6, %v442_v10 }
  0xc3   : > { %v508_v19 = vadd.f32 %v505_v16, %v475_v13 }
  0xc8   : > { %v486_v62 = vpop.permute.xlu1 %485 }
  0xc9   : > { %vm491_vm14 = vcmp.eq.s32.totalorder %v1110_v29, %v486_v62  ;;  %v561_v29 = vld [vmem:[#allocation3 + $0x18] sm:$0xff] }
  0xca   : > { %590 = vmatpush.msra.mxu1 %v561_v29 }
  0xcc   : > { %591 = vmatpush.msra.mxu1 %v560_v31 }
  0xce   : > { %592 = vmatpush.msra.mxu1 %v559_v33 }
  0xd0   : > { %593 = vmatpush.msra.mxu1 %v558_v34 }
  0xd1   : > { %v499_v15 = vpop.permute.xlu1 %498  ;;  %594 = vmatmul.f32.vlgmr.msra.gmra.mxu1 %v557_v35 }
  0xd2   : > { %v506_v17 = vsel %vm491_vm14, %v499_v15, 0.0 }
  0xd3   : > { %v509_v18 = vadd.f32 %v506_v17, %v476_v14 }
  0xd5   : > { %v511_v21 = vpack.c.bf16 %v509_v18, %v508_v19 }
  0xd7   : > { %540 = vmatpush.bf16.msra.mxu0 %v511_v21 }
  0xda   : > { %773 = vmatmul.msk.bf16.vlgmr.msra.gmra.mxu0 %vm525_vm15, %v523_v22 }
 0x14e   : > { %v595_v42 = vpop.f32.mrf.mxu1 }
 0x14f   : > { %v596_v43 = vadd.f32 %v869_v41, %v595_v42 }
 0x157   : > { %v542_v37 = vpop.f32.mrf.mxu0 }
 0x158   : > { %v546_v38 = vadd.f32 %v542_v37, %v524_v36 }
 0x15a   : > { %548 = vst.msk [vmem:[#allocation2] sm:$0xff] %vm366_vm5, %v546_v38 }
 0x15f   : > { %v544_v39 = vpop.f32.mrf.mxu0 }
 0x161   : > { %v552_v40 = vld [vmem:[#allocation2] sm:$0xff] }
 0x162   : > { %774 = vmatmul.msk.f32.vlgmr.msra.gmra.mxu2 %vm366_vm5, %v552_v40 }
 0x1e5   : > { %v618_v44 = vpop.f32.mrf.mxu2 }
 0x1e6   : > { %v619_v45 = vadd.f32 %v618_v44, %v596_v43 }
 0x1e8   : > { %621 = vst [vmem:[%s341_s19] sm:$0xff] %v619_v45 }
 0x1e9   : > { %927 = shalt.err (!%p924_p9)
}
 0x1ea   : > { %783 = dma.vmem_to_hbm [thread:$0]  (%p1072_p4), %s636_s20, 128, %s638_s22, %s623_s23  }
 0x1eb PF: > { %p795_p10 = scmp.ge.s32.totalorder %s982_s29, 2  ;;  %s649_s30 = sand.u32 1, %s962_s24  }
 0x1ec   : > { %s650_s17 = scalar_lea.sflag [#allocation5], %s649_s30 }
 0x1ed   : > { %p790_p11 = pnand %p795_p10, %p1079_p8 }
 0x1ef   : > { %p791_p12 = pneg %p790_p11 }
 0x1f1   : > { %957 = dma.done.wait (%p791_p12), %s650_s17, 128  }
 0x1f2   : > { %959 = vsyncadd (%p791_p12), %s650_s17, 4294967168  ;;  %s21_s29 = sadd.s32 1, %s982_s29   ;;  %s1202_s24 = smov %s966_s25 }
 0x1f3   : > { %p18_p13 = scmp.ge.s32.totalorder %s21_s29, 4   ;;  %s1203_s25 = smov %s970_s26 }
 0x1f4   : > { %s1204_s26 = smov %s1085_s14  ;;  %s1205_s27 = smov %s978_s28 }
 0x1f5   : > { %s1206_s28 = smov %s1208_s9  ;;  %20 = sbr.rel (!%p18_p13) target bundleno = 5 (0x5), region = 105 }
 0x1fa   :  { %656 = vsyncpa [#allocation4], 1 }
 0x1fb   :  { %658 = vsyncpa [#allocation4 + $0x1], 1 }
 0x1fc   :  { %659 = vsyncpa [#allocation5], 1 }
 0x1fd   :  { %661 = vsyncpa [#allocation5 + $0x1], 1 }

</bundles_post_ra>
